<compile_context>
chip_gen: v7x
topology: tpu7x:2x2x1
jax: 0.10.0
libtpu: 0.0.40
codegen_flags: <defaults>
</compile_context>

<pallas_src>
import jax
import jax.numpy as jnp
from jax.experimental import pallas as pl
from jax.experimental.pallas import tpu as pltpu


def _round_up(x, m):
    return (x + m - 1) // m * m


def policy_net_kernel(x_ref, w1_ref, b1_ref, w2_ref, b2_ref,
                      w3_ref, b3_ref, w4_ref, b4_ref, prob_ref):
    x = x_ref[...]

    h = jnp.tanh(jnp.dot(x, w1_ref[...], preferred_element_type=jnp.float32)
                 + b1_ref[...])
    h = jnp.tanh(jnp.dot(h, w2_ref[...], preferred_element_type=jnp.float32)
                 + b2_ref[...])
    h = jnp.tanh(jnp.dot(h, w3_ref[...], preferred_element_type=jnp.float32)
                 + b3_ref[...])

    # Logits are padded to a lane-dense width (multiple of 128); padded
    # columns carry a -1e30 bias so exp underflows to exactly 0 there.
    logits = (jnp.dot(h, w4_ref[...], preferred_element_type=jnp.float32)
              + b4_ref[...])

    # softmax over dim=1 (action dimension), numerically stable.
    m = jnp.max(logits, axis=1, keepdims=True)
    e = jnp.exp(logits - m)
    denom = jnp.sum(e, axis=1, keepdims=True)
    # Exact reciprocal keeps the divide off the VPU path while preserving
    # sum-to-1 within f32 rounding.
    prob_ref[...] = e * pl.reciprocal(denom, approx=False)


def policy_net_forward(state, params, *, block_batch=256):
    """state: (B, state_dim) f32. Returns categorical probs (B, action_dim)."""
    w1, b1, w2, b2, w3, b3, w4, b4 = params
    B, state_dim = state.shape
    hidden = w1.shape[1]
    action_dim = w4.shape[1]

    # ---- lane-dense output: pad action dim to a multiple of 128 ----------
    pad_a = _round_up(max(action_dim, 128), 128)
    w4p = jnp.zeros((hidden, pad_a), jnp.float32).at[:, :action_dim].set(w4)
    b4p = jnp.full((1, pad_a), -1e30, jnp.float32).at[:, :action_dim].set(b4)

    # ---- batch tiling: multiple of 8 sublanes, capped at block_batch ------
    tb = block_batch if B >= block_batch else _round_up(max(B, 8), 8)
    padded_b = _round_up(B, tb)
    if padded_b != B:
        # Zero-padded rows stay finite through tanh/softmax; sliced off below.
        state = jnp.pad(state, ((0, padded_b - B), (0, 0)))

    grid = (padded_b // tb,)

    def resident(arr):
        # Weights / biases: same block for every grid step -> DMA'd once,
        # stay VMEM-resident across the batch loop.
        return pl.BlockSpec(arr.shape, lambda i: (0, 0))

    flops = 2 * padded_b * (state_dim * hidden
                            + 2 * hidden * hidden
                            + hidden * pad_a)
    transcendentals = padded_b * (3 * hidden + pad_a)
    bytes_accessed = 4 * (padded_b * state_dim + padded_b * pad_a
                          + state_dim * hidden + 2 * hidden * hidden
                          + hidden * pad_a + 3 * hidden + pad_a)

    out = pl.pallas_call(
        policy_net_kernel,
        out_shape=jax.ShapeDtypeStruct((padded_b, pad_a), jnp.float32),
        grid_spec=pltpu.PrefetchScalarGridSpec(
            num_scalar_prefetch=0,
            grid=grid,
            in_specs=[
                pl.BlockSpec((tb, state_dim), lambda i: (i, 0)),
                resident(w1), resident(b1),
                resident(w2), resident(b2),
                resident(w3), resident(b3),
                resident(w4p), resident(b4p),
            ],
            out_specs=pl.BlockSpec((tb, pad_a), lambda i: (i, 0)),
        ),
        compiler_params=pltpu.CompilerParams(
            dimension_semantics=("parallel",)),
        cost_estimate=pl.CostEstimate(
            flops=flops,
            transcendentals=transcendentals,
            bytes_accessed=bytes_accessed),
    )(state, w1, b1, w2, b2, w3, b3, w4p, b4p)

    return out[:B, :action_dim]


def init_linear(key, in_features, out_features):
    """PyTorch nn.Linear default init: U(-1/sqrt(in), 1/sqrt(in)).

    Returned weight is already transposed to (in_features, out_features)."""
    kw, kb = jax.random.split(key)
    bound = 1.0 / jnp.sqrt(jnp.float32(in_features))
    w = jax.random.uniform(kw, (in_features, out_features), jnp.float32,
                           minval=-bound, maxval=bound)
    b = jax.random.uniform(kb, (1, out_features), jnp.float32,
                           minval=-bound, maxval=bound)
    return w, b


def reference_forward(state, params):
    w1, b1, w2, b2, w3, b3, w4, b4 = params
    h = jnp.tanh(state @ w1 + b1)
    h = jnp.tanh(h @ w2 + b2)
    h = jnp.tanh(h @ w3 + b3)
    return jax.nn.softmax(h @ w4 + b4, axis=1)


if __name__ == "__main__":
    # Small shapes consistent with the module
    batch, state_dim, hidden, action_dim = 4, 8, 32, 6

    key = jax.random.PRNGKey(0)
    k_state, k1, k2, k3, k4, k_big = jax.random.split(key, 6)

    state = jax.random.normal(k_state, (batch, state_dim), jnp.float32)

    w1, b1 = init_linear(k1, state_dim, hidden)
    w2, b2 = init_linear(k2, hidden, hidden)
    w3, b3 = init_linear(k3, hidden, hidden)
    w4, b4 = init_linear(k4, hidden, action_dim)
    params = (w1, b1, w2, b2, w3, b3, w4, b4)

    probs = policy_net_forward(state, params)
    probs = jax.block_until_ready(probs)

    ref = reference_forward(state, params)
    assert probs.shape == (batch, action_dim)
    assert jnp.allclose(probs, ref, atol=1e-5, rtol=1e-5)
    assert jnp.allclose(jnp.sum(probs, axis=1), 1.0, atol=1e-5)

    # Exercise the multi-tile grid path (batch not a multiple of the tile).
    big_batch = 300
    big_state = jax.random.normal(k_big, (big_batch, state_dim), jnp.float32)
    big_probs = jax.block_until_ready(policy_net_forward(big_state, params))
    big_ref = reference_forward(big_state, params)
    assert big_probs.shape == (big_batch, action_dim)
    assert jnp.allclose(big_probs, big_ref, atol=1e-5, rtol=1e-5)
    assert jnp.allclose(jnp.sum(big_probs, axis=1), 1.0, atol=1e-5)

    print("KERNEL_OK")
</pallas_src>

<mosaic_0001>
module attributes {stable_mosaic.version = 11 : i64} {
  func.func @policy_net_kernel(%arg0: i32, %arg1: memref<8x8xf32, #tpu.memory_space<vmem>>, %arg2: memref<8x32xf32, #tpu.memory_space<vmem>>, %arg3: memref<1x32xf32, #tpu.memory_space<vmem>>, %arg4: memref<32x32xf32, #tpu.memory_space<vmem>>, %arg5: memref<1x32xf32, #tpu.memory_space<vmem>>, %arg6: memref<32x32xf32, #tpu.memory_space<vmem>>, %arg7: memref<1x32xf32, #tpu.memory_space<vmem>>, %arg8: memref<32x128xf32, #tpu.memory_space<vmem>>, %arg9: memref<1x128xf32, #tpu.memory_space<vmem>>, %arg10: memref<8x128xf32, #tpu.memory_space<vmem>>) attributes {dimension_semantics = [#tpu.dimension_semantics<parallel>], iteration_bounds = array<i64: 1>, scalar_prefetch = 0 : i64, scratch_operands = 0 : i64, tpu.core_type = #tpu.core_type<tc>, window_params = [{transform_indices = @transform_0, window_bounds = array<i64: 8, 8>}, {pipeline_mode = #tpu.pipeline_mode<synchronous>, transform_indices = @transform_1, window_bounds = array<i64: 8, 32>}, {pipeline_mode = #tpu.pipeline_mode<synchronous>, transform_indices = @transform_2, window_bounds = array<i64: 1, 32>}, {pipeline_mode = #tpu.pipeline_mode<synchronous>, transform_indices = @transform_3, window_bounds = array<i64: 32, 32>}, {pipeline_mode = #tpu.pipeline_mode<synchronous>, transform_indices = @transform_4, window_bounds = array<i64: 1, 32>}, {pipeline_mode = #tpu.pipeline_mode<synchronous>, transform_indices = @transform_5, window_bounds = array<i64: 32, 32>}, {pipeline_mode = #tpu.pipeline_mode<synchronous>, transform_indices = @transform_6, window_bounds = array<i64: 1, 32>}, {pipeline_mode = #tpu.pipeline_mode<synchronous>, transform_indices = @transform_7, window_bounds = array<i64: 32, 128>}, {pipeline_mode = #tpu.pipeline_mode<synchronous>, transform_indices = @transform_8, window_bounds = array<i64: 1, 128>}, {transform_indices = @transform_9, window_bounds = array<i64: 8, 128>}]} {
    %c0 = arith.constant 0 : index
    %c0_0 = arith.constant 0 : index
    %0 = vector.load %arg1[%c0, %c0_0] : memref<8x8xf32, #tpu.memory_space<vmem>>, vector<8x8xf32>
    %c0_1 = arith.constant 0 : index
    %c0_2 = arith.constant 0 : index
    %1 = vector.load %arg2[%c0_1, %c0_2] : memref<8x32xf32, #tpu.memory_space<vmem>>, vector<8x32xf32>
    %cst = arith.constant dense<0.000000e+00> : vector<8x32xf32>
    %2 = tpu.matmul %0, %1, %cst {dimension_numbers = #tpu.dot_dimension_numbers<[1], [0], [0], [1], [0, 0, 1, 1], [], []>} : vector<8x8xf32>, vector<8x32xf32>, vector<8x32xf32> -> vector<8x32xf32>
    %c0_3 = arith.constant 0 : index
    %c0_4 = arith.constant 0 : index
    %3 = vector.load %arg3[%c0_3, %c0_4] : memref<1x32xf32, #tpu.memory_space<vmem>>, vector<1x32xf32>
    %4 = vector.broadcast %3 : vector<1x32xf32> to vector<8x32xf32>
    %5 = arith.addf %2, %4 : vector<8x32xf32>
    %6 = math.tanh %5 : vector<8x32xf32>
    %c0_5 = arith.constant 0 : index
    %c0_6 = arith.constant 0 : index
    %7 = vector.load %arg4[%c0_5, %c0_6] : memref<32x32xf32, #tpu.memory_space<vmem>>, vector<32x32xf32>
    %cst_7 = arith.constant dense<0.000000e+00> : vector<8x32xf32>
    %8 = tpu.matmul %6, %7, %cst_7 {dimension_numbers = #tpu.dot_dimension_numbers<[1], [0], [0], [1], [0, 0, 1, 1], [], []>} : vector<8x32xf32>, vector<32x32xf32>, vector<8x32xf32> -> vector<8x32xf32>
    %c0_8 = arith.constant 0 : index
    %c0_9 = arith.constant 0 : index
    %9 = vector.load %arg5[%c0_8, %c0_9] : memref<1x32xf32, #tpu.memory_space<vmem>>, vector<1x32xf32>
    %10 = vector.broadcast %9 : vector<1x32xf32> to vector<8x32xf32>
    %11 = arith.addf %8, %10 : vector<8x32xf32>
    %12 = math.tanh %11 : vector<8x32xf32>
    %c0_10 = arith.constant 0 : index
    %c0_11 = arith.constant 0 : index
    %13 = vector.load %arg6[%c0_10, %c0_11] : memref<32x32xf32, #tpu.memory_space<vmem>>, vector<32x32xf32>
    %cst_12 = arith.constant dense<0.000000e+00> : vector<8x32xf32>
    %14 = tpu.matmul %12, %13, %cst_12 {dimension_numbers = #tpu.dot_dimension_numbers<[1], [0], [0], [1], [0, 0, 1, 1], [], []>} : vector<8x32xf32>, vector<32x32xf32>, vector<8x32xf32> -> vector<8x32xf32>
    %c0_13 = arith.constant 0 : index
    %c0_14 = arith.constant 0 : index
    %15 = vector.load %arg7[%c0_13, %c0_14] : memref<1x32xf32, #tpu.memory_space<vmem>>, vector<1x32xf32>
    %16 = vector.broadcast %15 : vector<1x32xf32> to vector<8x32xf32>
    %17 = arith.addf %14, %16 : vector<8x32xf32>
    %18 = math.tanh %17 : vector<8x32xf32>
    %c0_15 = arith.constant 0 : index
    %c0_16 = arith.constant 0 : index
    %19 = vector.load %arg8[%c0_15, %c0_16] : memref<32x128xf32, #tpu.memory_space<vmem>>, vector<32x128xf32>
    %cst_17 = arith.constant dense<0.000000e+00> : vector<8x128xf32>
    %20 = tpu.matmul %18, %19, %cst_17 {dimension_numbers = #tpu.dot_dimension_numbers<[1], [0], [0], [1], [0, 0, 1, 1], [], []>} : vector<8x32xf32>, vector<32x128xf32>, vector<8x128xf32> -> vector<8x128xf32>
    %c0_18 = arith.constant 0 : index
    %c0_19 = arith.constant 0 : index
    %21 = vector.load %arg9[%c0_18, %c0_19] : memref<1x128xf32, #tpu.memory_space<vmem>>, vector<1x128xf32>
    %22 = vector.broadcast %21 : vector<1x128xf32> to vector<8x128xf32>
    %23 = arith.addf %20, %22 : vector<8x128xf32>
    %cst_20 = arith.constant dense<0xFF800000> : vector<8xf32>
    %24 = vector.multi_reduction <maximumf>, %23, %cst_20 [1] : vector<8x128xf32> to vector<8xf32>
    %25 = vector.shape_cast %24 : vector<8xf32> to vector<8x1xf32>
    %26 = vector.broadcast %25 : vector<8x1xf32> to vector<8x128xf32>
    %27 = arith.subf %23, %26 : vector<8x128xf32>
    %28 = math.exp %27 : vector<8x128xf32>
    %cst_21 = arith.constant dense<0.000000e+00> : vector<8xf32>
    %29 = vector.multi_reduction <add>, %28, %cst_21 [1] : vector<8x128xf32> to vector<8xf32>
    %30 = vector.shape_cast %29 : vector<8xf32> to vector<8x1xf32>
    %31 = tpu.reciprocal %30 : vector<8x1xf32> -> vector<8x1xf32>
    %32 = vector.broadcast %31 : vector<8x1xf32> to vector<8x128xf32>
    %33 = arith.mulf %28, %32 : vector<8x128xf32>
    %c0_22 = arith.constant 0 : index
    %c0_23 = arith.constant 0 : index
    %34 = vector.load %arg10[%c0_22, %c0_23] : memref<8x128xf32, #tpu.memory_space<vmem>>, vector<8x128xf32>
    tpu.vector_store %arg10[%c0_22, %c0_23], %33 {strides = array<i32>} : memref<8x128xf32, #tpu.memory_space<vmem>>, vector<8x128xf32>,
    return
  }
  func.func @transform_0(%arg0: i32) -> (i32, i32) {
    %c0_i32 = arith.constant 0 : i32
    %c0_i32_0 = arith.constant 0 : i32
    return %arg0, %c0_i32 : i32, i32
  }
  func.func @transform_1(%arg0: i32) -> (i32, i32) {
    %c0_i32 = arith.constant 0 : i32
    %c0_i32_0 = arith.constant 0 : i32
    %c0_i32_1 = arith.constant 0 : i32
    return %c0_i32, %c0_i32_0 : i32, i32
  }
  func.func @transform_2(%arg0: i32) -> (i32, i32) {
    %c0_i32 = arith.constant 0 : i32
    %c0_i32_0 = arith.constant 0 : i32
    %c0_i32_1 = arith.constant 0 : i32
    return %c0_i32, %c0_i32_0 : i32, i32
  }
  func.func @transform_3(%arg0: i32) -> (i32, i32) {
    %c0_i32 = arith.constant 0 : i32
    %c0_i32_0 = arith.constant 0 : i32
    %c0_i32_1 = arith.constant 0 : i32
    return %c0_i32, %c0_i32_0 : i32, i32
  }
  func.func @transform_4(%arg0: i32) -> (i32, i32) {
    %c0_i32 = arith.constant 0 : i32
    %c0_i32_0 = arith.constant 0 : i32
    %c0_i32_1 = arith.constant 0 : i32
    return %c0_i32, %c0_i32_0 : i32, i32
  }
  func.func @transform_5(%arg0: i32) -> (i32, i32) {
    %c0_i32 = arith.constant 0 : i32
    %c0_i32_0 = arith.constant 0 : i32
    %c0_i32_1 = arith.constant 0 : i32
    return %c0_i32, %c0_i32_0 : i32, i32
  }
  func.func @transform_6(%arg0: i32) -> (i32, i32) {
    %c0_i32 = arith.constant 0 : i32
    %c0_i32_0 = arith.constant 0 : i32
    %c0_i32_1 = arith.constant 0 : i32
    return %c0_i32, %c0_i32_0 : i32, i32
  }
  func.func @transform_7(%arg0: i32) -> (i32, i32) {
    %c0_i32 = arith.constant 0 : i32
    %c0_i32_0 = arith.constant 0 : i32
    %c0_i32_1 = arith.constant 0 : i32
    return %c0_i32, %c0_i32_0 : i32, i32
  }
  func.func @transform_8(%arg0: i32) -> (i32, i32) {
    %c0_i32 = arith.constant 0 : i32
    %c0_i32_0 = arith.constant 0 : i32
    %c0_i32_1 = arith.constant 0 : i32
    return %c0_i32, %c0_i32_0 : i32, i32
  }
  func.func @transform_9(%arg0: i32) -> (i32, i32) {
    %c0_i32 = arith.constant 0 : i32
    %c0_i32_0 = arith.constant 0 : i32
    return %arg0, %c0_i32 : i32, i32
  }
}

</mosaic_0001>

<bundles_post_ra>
// kernel: tpu_custom_call.1
= control target key start
LH: loop header
LB: loop body
LE: loop exit
PB: predicated region body
PF: predicated region fallthrough
CT: control target
= control target key end

     0   :  { %14 = vsyncpa [#allocation3], 0  ;;  %s866_s0 = inlined_call_operand.hbm [shape: f32[8,8], index: 0, kind: input, shape index: {}]   ;;  %s867_s1 = inlined_call_operand.hbm [shape: f32[8,32], index: 1, kind: input, shape index: {}]   ;;  %s868_s2 = inlined_call_operand.vmem [shape: f32[1,32], index: 2, kind: input, shape index: {}]   ;;  %s869_s3 = inlined_call_operand.hbm [shape: f32[32,32], index: 3, kind: input, shape index: {}]   ;;  %s870_s4 = inlined_call_operand.vmem [shape: f32[1,32], index: 4, kind: input, shape index: {}]   ;;  %s871_s5 = inlined_call_operand.hbm [shape: f32[32,32], index: 5, kind: input, shape index: {}]   ;;  %s872_s6 = inlined_call_operand.vmem [shape: f32[1,32], index: 6, kind: input, shape index: {}]   ;;  %s873_s7 = inlined_call_operand.hbm [shape: f32[32,128], index: 7, kind: input, shape index: {}]   ;;  %s874_s8 = inlined_call_operand.vmem [shape: f32[1,128], index: 8, kind: input, shape index: {}]   ;;  %s875_s9 = inlined_call_operand.hbm [shape: f32[8,128], index: 9, kind: output, shape index: {}]  }
   0x1   :  { %15 = vsyncpa [#allocation6], 0 }
   0x2   :  { %16 = vsyncpa [#allocation9], 0 }
   0x3   :  { %17 = vsyncpa [#allocation4], 0  ;;  %s705_s30 = smov [#allocation5]   ;;  %s565_s13 = scalar_lea.hbm %s867_s1, 128 }
   0x4   :  { %s34_s10 = sshll.u32 %s705_s30, 4  ;;  %p566_p0 = scmp.ne.s32.totalorder %s867_s1, %s565_s13  ;;  %s35_s10 = int_to_ptr.vmem [resolvable:$true] %s34_s10 }
   0x5   :  { %p569_p1 = scmp.lt.u32.totalorder %s565_s13, %s867_s1 }
   0x7   :  { %p571_p2 = pnand %p569_p1, %p566_p0 }
   0x9   :  { %574 = shalt.err (!%p571_p2)
}
   0xa   :  { %s575_s18 = scalar_lea.vmem %s35_s10, 128  ;;  %p580_p4 = scmp.lt.s32.totalorder %s35_s10, %s35_s10 }
   0xb   :  { %p576_p3 = scmp.ne.s32.totalorder %s35_s10, %s575_s18  ;;  %p581_p5 = scmp.lt.s32.totalorder %s575_s18, %s575_s18 }
   0xd   :  { %p582_p6 = por %p581_p5, %p580_p4 }
   0xf   :  { %p583_p7 = pnand %p582_p6, %p576_p3 }
  0x11   :  { %586 = shalt.err (!%p583_p7)
}
  0x12   :  { %37 = dma.hbm_to_vmem [thread:$0]  %s867_s1, 128, %s35_s10, [#allocation6]  }
  0x13   :  { %s706_s21 = smov [#allocation8]   ;;  %s707_s23 = smov [#allocation2]  }
  0x14   :  { %s59_s22 = sshll.u32 %s706_s21, 4  ;;  %s24_s24 = sshll.u32 %s707_s23, 4  ;;  %s60_s22 = int_to_ptr.vmem [resolvable:$true] %s59_s22  ;;  %s25_s24 = int_to_ptr.vmem [resolvable:$true] %s24_s24 }
  0x15   :  { %s587_s27 = scalar_lea.hbm %s871_s5, 512 }
  0x16   :  { %p588_p8 = scmp.ne.s32.totalorder %s871_s5, %s587_s27  ;;  %p591_p9 = scmp.lt.u32.totalorder %s587_s27, %s871_s5 }
  0x18   :  { %p593_p10 = pnand %p591_p9, %p588_p8 }
  0x1a   :  { %596 = shalt.err (!%p593_p10)
}
  0x1b   :  { %s597_s1 = scalar_lea.vmem %s60_s22, 512  ;;  %p602_p12 = scmp.lt.s32.totalorder %s60_s22, %s60_s22 }
  0x1c   :  { %p598_p11 = scmp.ne.s32.totalorder %s60_s22, %s597_s1  ;;  %p603_p13 = scmp.lt.s32.totalorder %s597_s1, %s597_s1 }
  0x1e   :  { %p604_p0 = por %p603_p13, %p602_p12 }
  0x20   :  { %p605_p1 = pnand %p604_p0, %p598_p11 }
  0x22   :  { %608 = shalt.err (!%p605_p1)
}
  0x23   :  { %s708_s10 = smov 128   ;;  %s709_s12 = smov 8  }
  0x24   :  { %65 = dma.hbm_to_vmem [thread:$0]  %s871_s5, 512, %s60_s22, [#allocation9], %s708_s10, %s708_s10, %s709_s12  }
  0x25   :  { %s609_s17 = scalar_lea.hbm %s866_s0, 128 }
  0x26   :  { %p610_p2 = scmp.ne.s32.totalorder %s866_s0, %s609_s17  ;;  %p613_p3 = scmp.lt.u32.totalorder %s609_s17, %s866_s0 }
  0x28   :  { %p615_p4 = pnand %p613_p3, %p610_p2 }
  0x2a   :  { %618 = shalt.err (!%p615_p4)
}
  0x2b   :  { %s619_s23 = scalar_lea.vmem %s25_s24, 128  ;;  %p624_p6 = scmp.lt.s32.totalorder %s25_s24, %s25_s24 }
  0x2c   :  { %p620_p5 = scmp.ne.s32.totalorder %s25_s24, %s619_s23  ;;  %p625_p7 = scmp.lt.s32.totalorder %s619_s23, %s619_s23 }
  0x2e   :  { %p626_p8 = por %p625_p7, %p624_p6 }
  0x30   :  { %p627_p9 = pnand %p626_p8, %p620_p5 }
  0x32   :  { %630 = shalt.err (!%p627_p9)
}
  0x33   :  { %27 = dma.hbm_to_vmem [thread:$0]  %s866_s0, 128, %s25_s24, [#allocation3]  }
  0x34   :  { %s710_s25 = smov [#allocation7]   ;;  %s711_s27 = smov [#allocation10]  }
  0x35   :  { %s45_s26 = sshll.u32 %s710_s25, 4  ;;  %s73_s28 = sshll.u32 %s711_s27, 4  ;;  %s46_s26 = int_to_ptr.vmem [resolvable:$true] %s45_s26  ;;  %s74_s28 = int_to_ptr.vmem [resolvable:$true] %s73_s28 }
  0x36   :  { %s631_s11 = scalar_lea.hbm %s869_s3, 512 }
  0x37   :  { %p632_p10 = scmp.ne.s32.totalorder %s869_s3, %s631_s11  ;;  %p635_p11 = scmp.lt.u32.totalorder %s631_s11, %s869_s3 }
  0x39   :  { %p637_p12 = pnand %p635_p11, %p632_p10 }
  0x3b   :  { %640 = shalt.err (!%p637_p12)
}
  0x3c   :  { %s641_s0 = scalar_lea.vmem %s46_s26, 512  ;;  %p646_p0 = scmp.lt.s32.totalorder %s46_s26, %s46_s26 }
  0x3d   :  { %p642_p13 = scmp.ne.s32.totalorder %s46_s26, %s641_s0  ;;  %p647_p1 = scmp.lt.s32.totalorder %s641_s0, %s641_s0 }
  0x3f   :  { %p648_p2 = por %p647_p1, %p646_p0 }
  0x41   :  { %p649_p3 = pnand %p648_p2, %p642_p13 }
  0x43   :  { %652 = shalt.err (!%p649_p3)
}
  0x44   :  { %51 = dma.hbm_to_vmem [thread:$0]  %s869_s3, 512, %s46_s26, [#allocation6], %s708_s10, %s708_s10, %s709_s12  }
  0x45   :  { %s653_s19 = scalar_lea.hbm %s873_s7, 512 }
  0x46   :  { %p654_p4 = scmp.ne.s32.totalorder %s873_s7, %s653_s19  ;;  %p657_p5 = scmp.lt.u32.totalorder %s653_s19, %s873_s7 }
  0x48   :  { %p659_p6 = pnand %p657_p5, %p654_p4 }
  0x4a   :  { %662 = shalt.err (!%p659_p6)
}
  0x4b   :  { %s663_s22 = scalar_lea.vmem %s74_s28, 512  ;;  %p668_p8 = scmp.lt.s32.totalorder %s74_s28, %s74_s28 }
  0x4c   :  { %p664_p7 = scmp.ne.s32.totalorder %s74_s28, %s663_s22  ;;  %p669_p9 = scmp.lt.s32.totalorder %s663_s22, %s663_s22 }
  0x4e   :  { %p670_p10 = por %p669_p9, %p668_p8 }
  0x50   :  { %p671_p11 = pnand %p670_p10, %p664_p7 }
  0x52   :  { %674 = shalt.err (!%p671_p11)
}
  0x53   :  { %79 = dma.hbm_to_vmem [thread:$0]  %s873_s7, 512, %s74_s28, [#allocation9], %s708_s10, %s708_s10, %s709_s12  }
  0x54   :  { %697 = dma.done.wait [#allocation3], 128  }
  0x55   :  { %698 = vsyncadd [#allocation3], 4294967168 }
  0x56   :  { %699 = dma.done.wait [#allocation6], 640  }
  0x57   :  { %700 = vsyncadd [#allocation6], 4294966656 }
  0x58   :  { %701 = dma.done.wait [#allocation9], 1024  }
  0x59   :  { %702 = vsyncadd [#allocation9], 4294966272  ;;  %v712_v0 = vmov 0.0   ;;  %vm713_vm0 = vmmov 0   ;;  %vm106_vm1 = vcmask 64512   ;;  %v98_v1 = vld [vmem:[#allocation5] sm:$0xff] }
  0x5a   :  { %488 = vmatprep.subr.mxu0 %v712_v0  ;;  %490 = vmatprep.mubr.msk.f32.mxu0 %vm713_vm0, %v712_v0  ;;  %v97_v2 = vld [vmem:[#allocation2] sm:$0xff]  ;;  %v181_v3 = vld [vmem:[#allocation7] sm:$0xff]  ;;  %v182_v4 = vld [vmem:[#allocation7 + $0x8] sm:$0xff]  ;;  %v714_v6 = vmov 0.0|0.0   ;;  %vm192_vm2 = vcmask 261120  }
  0x5b   :  { %501 = vmatprep.mubr.msk.f32.mxu1 %vm713_vm0, %v712_v0  ;;  %489 = vmatpush3.msra.mxu0 %v98_v1  ;;  %v183_v5 = vld [vmem:[#allocation7 + $0x10] sm:$0xff]  ;;  %v527_v7 = vpack.c.bf16 %v182_v4, %v181_v3  ;;  %v184_v8 = vld [vmem:[#allocation7 + $0x18] sm:$0xff]  ;;  %v267_v15 = vld [vmem:[#allocation8] sm:$0xff] }
  0x5c   :  { %491 = vmatmul.mubr.msk.f32.vlgmr.msra.gmra.mrb[0].mxu0 %vm106_vm1, %v97_v2  ;;  %526 = vmatprep.subr.bf16.mxu1 %v714_v6  ;;  %v530_v9 = vpack.c.bf16 %v184_v8, %v183_v5  ;;  %v463_v10 = vld [vmem:[%s868_s2] ss:$0 sm:$0xff]  ;;  %v268_v16 = vld [vmem:[#allocation8 + $0x8] sm:$0xff]  ;;  %v270_v19 = vld [vmem:[#allocation8 + $0x18] sm:$0xff] }
  0x5d   :  { %512 = vmatprep.mubr.msk.f32.mxu0 %vm713_vm0, %v712_v0  ;;  %532 = vmatprep.subr.bf16.mxu0 %v714_v6  ;;  %v269_v17 = vld [vmem:[#allocation8 + $0x10] sm:$0xff]  ;;  %v533_v18 = vpack.c.bf16 %v268_v16, %v267_v15  ;;  %v352_v26 = vld [vmem:[#allocation10] sm:$0xff]  ;;  %v353_v27 = vld [vmem:[#allocation10 + $0x8] sm:$0xff] }
  0x5e   :  { %528 = vmatpush3.bf16.msra.mxu1 %v527_v7  ;;  %v536_v20 = vpack.c.bf16 %v270_v19, %v269_v17  ;;  %v465_v21 = vld [vmem:[%s870_s4] ss:$0 sm:$0xff]  ;;  %v539_v29 = vpack.c.bf16 %v353_v27, %v352_v26  ;;  %v355_v30 = vld [vmem:[#allocation10 + $0x18] sm:$0xff] }
  0x5f   :  { %529 = vmatprep.subr.bf16.mxu1 %v714_v6  ;;  %534 = vmatpush3.bf16.msra.mxu0 %v533_v18  ;;  %v354_v28 = vld [vmem:[#allocation10 + $0x10] sm:$0xff] }
  0x60   :  { %535 = vmatprep.subr.bf16.mxu0 %v714_v6  ;;  %v542_v31 = vpack.c.bf16 %v355_v30, %v354_v28  ;;  %v467_v32 = vld [vmem:[%s872_s6] ss:$0 sm:$0xff]  ;;  %s715_s6 = smov [#allocation11]  }
  0x61   :  { %v469_v37 = vld [vmem:[%s874_s8] ss:$0 sm:$0xff]  ;;  %s452_s29 = sshll.u32 %s715_s6, 4  ;;  %s453_s29 = int_to_ptr.vmem [resolvable:$true] %s452_s29 }
  0x62   :  { %531 = vmatpush3.bf16.msra.mxu1 %v530_v9  ;;  %s675_s30 = scalar_lea.vmem %s453_s29, 128  ;;  %p680_p13 = scmp.lt.s32.totalorder %s453_s29, %s453_s29 }
  0x63   :  { %538 = vmatprep.subr.bf16.mxu1 %v714_v6  ;;  %537 = vmatpush3.bf16.msra.mxu0 %v536_v20  ;;  %p676_p12 = scmp.ne.s32.totalorder %s453_s29, %s675_s30  ;;  %p681_p0 = scmp.lt.s32.totalorder %s675_s30, %s675_s30 }
  0x65   :  { %p682_p1 = por %p681_p0, %p680_p13 }
  0x67   :  { %p683_p2 = pnand %p682_p1, %p676_p12 }
 0x12f   :  { %v176_v11 = vpop.f32.mrb[0].mxu0 }
 0x130   :  { %v177_v12 = vadd.f32 %v463_v10, %v176_v11  ;;  %v492_v13 = vpop.f32.mrb[1].mxu0 }
 0x132   :  { %555 = vtanh.f32 %v177_v12 }
 0x13c   :  { %v556_v14 = vpop.eup %555 }
 0x13d   :  { %502 = vmatmul.mubr.msk.f32.vlgmr.msra.gmra.mrb[0].mxu1 %vm192_vm2, %v556_v14 }
 0x13e   :  { %523 = vmatprep.mubr.msk.f32.mxu1 %vm713_vm0, %v712_v0  ;;  %540 = vmatpush3.bf16.msra.mxu1 %v539_v29 }
 0x13f   :  { %541 = vmatprep.subr.bf16.mxu1 %v714_v6 }
 0x142   :  { %543 = vmatpush3.bf16.msra.mxu1 %v542_v31 }
 0x210   :  { %v262_v22 = vpop.f32.mrb[0].mxu1 }
 0x211   :  { %v263_v23 = vadd.f32 %v465_v21, %v262_v22  ;;  %v503_v24 = vpop.f32.mrb[1].mxu1 }
 0x213   :  { %557 = vtanh.f32 %v263_v23 }
 0x21d   :  { %v558_v25 = vpop.eup %557 }
 0x21e   :  { %513 = vmatmul.mubr.msk.f32.vlgmr.msra.gmra.mrb[2].mxu0 %vm192_vm2, %v558_v25 }
 0x2f1   :  { %v347_v33 = vpop.f32.mrb[2].mxu0 }
 0x2f2   :  { %v348_v34 = vadd.f32 %v467_v32, %v347_v33  ;;  %v514_v35 = vpop.f32.mrb[3].mxu0 }
 0x2f4   :  { %559 = vtanh.f32 %v348_v34 }
 0x2fe   :  { %v560_v36 = vpop.eup %559 }
 0x2ff   :  { %524 = vmatmul.mubr.msk.f32.vlgmr.msra.gmra.mrb[2].mxu1 %vm192_vm2, %v560_v36 }
 0x3d2   :  { %v432_v38 = vpop.f32.mrb[2].mxu1 }
 0x3d3   :  { %v433_v39 = vadd.f32 %v469_v37, %v432_v38  ;;  %v525_v40 = vpop.f32.mrb[3].mxu1 }
 0x3d5   :  { %436 = vmax.xlane.f32.xlu0 %v433_v39 }
 0x462   :  { %v437_v41 = vpop.xlane.xlu0 %436 }
 0x463   :  { %v438_v42 = vsub.f32 %v433_v39, %v437_v41 }
 0x465   :  { %v439_v43 = vmul.f32 1.442695, %v438_v42 }
 0x467   :  { %561 = vpow2.f32 %v439_v43 }
 0x471   :  { %v562_v44 = vpop.eup %561 }
 0x472   :  { %441 = vadd.xlane.f32.xlu0 %v562_v44 }
 0x4ff   :  { %v442_v45 = vpop.xlane.xlu0 %441 }
 0x500   :  { %563 = vrcp.f32 %v442_v45 }
 0x50a   :  { %v564_v46 = vpop.eup %563 }
 0x50b   :  { %v444_v47 = vmul.f32 %v564_v46, %v562_v44 }
 0x50d   :  { %445 = vst [vmem:[#allocation11] sm:$0xff] %v444_v47 }
 0x50e   :  { %686 = shalt.err (!%p683_p2)
}
 0x50f   :  { %s687_s1 = scalar_lea.hbm %s875_s9, 128 }
 0x510   :  { %p688_p3 = scmp.ne.s32.totalorder %s875_s9, %s687_s1  ;;  %p691_p4 = scmp.lt.u32.totalorder %s687_s1, %s875_s9 }
 0x512   :  { %p693_p5 = pnand %p691_p4, %p688_p3 }
 0x514   :  { %696 = shalt.err (!%p693_p5)
}
 0x515   :  { %455 = dma.vmem_to_hbm [thread:$0]  %s453_s29, 128, %s875_s9, [#allocation4]  }
 0x516   :  { %703 = dma.done.wait [#allocation4], 128  }
 0x517   :  { %704 = vsyncadd [#allocation4], 4294967168 }
 0x518   :  { %459 = vsyncpa [#allocation3], 1 }
 0x519   :  { %460 = vsyncpa [#allocation6], 1 }
 0x51a   :  { %461 = vsyncpa [#allocation9], 1 }
 0x51b   :  { %462 = vsyncpa [#allocation4], 1 }

</bundles_post_ra>
